<compile_context>
chip_gen: v7x
topology: tpu7x:2x2x1
jax: 0.10.0
libtpu: 0.0.40
codegen_flags: <defaults>
</compile_context>

<pallas_src>
import functools

import jax
import jax.numpy as jnp
from jax.experimental import pallas as pl
from jax.experimental.pallas import tpu as pltpu


def _approx_sigmoid(v):
    # exp -> EUP, approx reciprocal -> EUP; keeps VALU bundle slots free.
    return pl.reciprocal(1.0 + jnp.exp(-v), approx=True)


def _make_policy_kernel(D, H, OUT):
    """Fused forward: SwiGlu -> SwiGlu -> sigmoid, whole problem resident in VMEM.

    w_ref row layout (all lane-padded to cols = max(2H, D, OUT)):
      [0      , D     ) : W1_in^T  (D, 2H)  fused a|b gate weights, block 1
      [D      , D+H   ) : W1_out^T (H, D)
      [D+H    , 2D+H  ) : W2_in^T  (D, 2H)  fused a|b gate weights, block 2
      [2D+H   , 2D+2H ) : W2_out^T (H, OUT)
    b_ref rows: 0 = b1_in(2H), 1 = b1_out(D), 2 = b2_in(2H), 3 = b2_out(OUT)
    """

    def kernel(x_ref, w_ref, b_ref, o_ref):
        x = x_ref[...]

        def swiglu(h, w_in, b_in, w_out, b_out):
            # single fused gate matmul -> split into a / gate halves
            y = jnp.dot(h, w_in, preferred_element_type=jnp.float32) + b_in
            a, g = y[:, :H], y[:, H:]
            c = a * (g * _approx_sigmoid(g))            # a * SiLU(g)
            return jnp.dot(c, w_out, preferred_element_type=jnp.float32) + b_out

        h1 = swiglu(
            x,
            w_ref[0:D, 0:2 * H],                    b_ref[0:1, 0:2 * H],
            w_ref[D:D + H, 0:D],                    b_ref[1:2, 0:D],
        )
        z = swiglu(
            h1,
            w_ref[D + H:2 * D + H, 0:2 * H],        b_ref[2:3, 0:2 * H],
            w_ref[2 * D + H:2 * D + 2 * H, 0:OUT],  b_ref[3:4, 0:OUT],
        )
        # Final sigmoid kept exact (f32 divide) so outputs are strictly in [0, 1].
        o_ref[...] = 1.0 / (1.0 + jnp.exp(-z))

    return kernel


def init_linear(key, out_features, in_features):
    """PyTorch nn.Linear default init: U(-1/sqrt(fan_in), 1/sqrt(fan_in))."""
    kw, kb = jax.random.split(key)
    bound = 1.0 / jnp.sqrt(jnp.float32(in_features))
    w = jax.random.uniform(kw, (out_features, in_features), jnp.float32,
                           minval=-bound, maxval=bound)
    b = jax.random.uniform(kb, (out_features,), jnp.float32,
                           minval=-bound, maxval=bound)
    return w, b


def init_policy_params(key, input_dim, output_dim, expansion_factor=2):
    """Raw (PyTorch-layout) params of the two SwiGlu blocks."""
    D = input_dim
    H = D * expansion_factor
    keys = jax.random.split(key, 4)
    w1_in, b1_in = init_linear(keys[0], 2 * H, D)          # Linear(D, 4D)
    w1_out, b1_out = init_linear(keys[1], D, H)             # Linear(2D, D)
    w2_in, b2_in = init_linear(keys[2], 2 * H, D)           # Linear(D, 4D)
    w2_out, b2_out = init_linear(keys[3], output_dim, H)    # Linear(2D, out)
    return (w1_in, b1_in, w1_out, b1_out, w2_in, b2_in, w2_out, b2_out)


def pack_policy_params(raw_params):
    """Concatenate all weights / biases into 2 lane-padded f32 slabs (2 DMAs)."""
    (w1_in, b1_in, w1_out, b1_out, w2_in, b2_in, w2_out, b2_out) = raw_params
    cols = max(w1_in.shape[0], w1_out.shape[0], w2_out.shape[0])  # = 2H here

    def pad_w(w):                     # transpose to (in, out), pad lane dim
        wt = w.T
        return jnp.pad(wt, ((0, 0), (0, cols - wt.shape[1])))

    def pad_b(b):
        return jnp.pad(b, (0, cols - b.shape[0])).reshape(1, cols)

    w_slab = jnp.concatenate(
        [pad_w(w1_in), pad_w(w1_out), pad_w(w2_in), pad_w(w2_out)], axis=0)
    b_slab = jnp.concatenate(
        [pad_b(b1_in), pad_b(b1_out), pad_b(b2_in), pad_b(b2_out)], axis=0)
    return w_slab.astype(jnp.float32), b_slab.astype(jnp.float32)


@functools.partial(jax.jit, static_argnames=("output_dim", "expansion_factor"))
def policy_forward(x, w_slab, b_slab, output_dim, expansion_factor=2):
    """x: (B, D) standard-normal samples (Policy.forward draws these itself)."""
    B, D = x.shape
    H = D * expansion_factor
    kernel = _make_policy_kernel(D, H, output_dim)
    return pl.pallas_call(
        kernel,
        out_shape=jax.ShapeDtypeStruct((B, output_dim), jnp.float32),
        in_specs=[pl.BlockSpec(memory_space=pltpu.MemorySpace.VMEM)] * 3,
        out_specs=pl.BlockSpec(memory_space=pltpu.MemorySpace.VMEM),
    )(x, w_slab, b_slab)


def policy_reference(x, raw_params):
    """Pure-JAX reference (feature-dim chunk, exact sigmoid)."""
    (w1_in, b1_in, w1_out, b1_out, w2_in, b2_in, w2_out, b2_out) = raw_params

    def swiglu(h, w_in, b_in, w_out, b_out):
        y = h @ w_in.T + b_in
        half = y.shape[1] // 2
        a, g = y[:, :half], y[:, half:]
        return (a * (g * jax.nn.sigmoid(g))) @ w_out.T + b_out

    h = swiglu(x, w1_in, b1_in, w1_out, b1_out)
    h = swiglu(h, w2_in, b2_in, w2_out, b2_out)
    return jax.nn.sigmoid(h)


if __name__ == "__main__":
    input_dim = 32
    output_dim = 16
    batch_size = 8

    key = jax.random.PRNGKey(0)
    k_params, k_x = jax.random.split(key)

    raw_params = init_policy_params(k_params, input_dim, output_dim)
    w_slab, b_slab = pack_policy_params(raw_params)

    # Policy.forward samples x ~ N(0, 1) of shape (batch_size, input_dim).
    # TODO(synk): could be drawn in-kernel via pltpu.prng_seed/stateful_normal
    #             to drop one DMA; kept host-side for a deterministic reference.
    x = jax.random.normal(k_x, (batch_size, input_dim), jnp.float32)

    out = policy_forward(x, w_slab, b_slab, output_dim=output_dim)
    out = jax.block_until_ready(out)

    ref = policy_reference(x, raw_params)

    assert out.shape == (batch_size, output_dim)
    assert bool(jnp.all(jnp.isfinite(out)))
    assert bool(jnp.all((out >= 0.0) & (out <= 1.0)))
    # Loose tolerance: gate sigmoids use the EUP approx reciprocal.
    assert bool(jnp.allclose(out, ref, atol=1e-2, rtol=1e-2))

    print("KERNEL_OK")
</pallas_src>

<mosaic_0001>
module attributes {stable_mosaic.version = 11 : i64} {
  func.func @kernel(%arg0: memref<8x32xf32, #tpu.memory_space<vmem>>, %arg1: memref<192x128xf32, #tpu.memory_space<vmem>>, %arg2: memref<4x128xf32, #tpu.memory_space<vmem>>, %arg3: memref<8x16xf32, #tpu.memory_space<vmem>>) attributes {dimension_semantics = [], scalar_prefetch = 0 : i64, scratch_operands = 0 : i64, tpu.core_type = #tpu.core_type<tc>} {
    %c0 = arith.constant 0 : index
    %c0_0 = arith.constant 0 : index
    %0 = vector.load %arg0[%c0, %c0_0] : memref<8x32xf32, #tpu.memory_space<vmem>>, vector<8x32xf32>
    %c0_1 = arith.constant 0 : index
    %c0_2 = arith.constant 0 : index
    %1 = vector.load %arg1[%c0_1, %c0_2] : memref<192x128xf32, #tpu.memory_space<vmem>>, vector<32x128xf32>
    %c0_3 = arith.constant 0 : index
    %c0_4 = arith.constant 0 : index
    %2 = vector.load %arg2[%c0_3, %c0_4] : memref<4x128xf32, #tpu.memory_space<vmem>>, vector<1x128xf32>
    %c32 = arith.constant 32 : index
    %c0_5 = arith.constant 0 : index
    %3 = vector.load %arg1[%c32, %c0_5] : memref<192x128xf32, #tpu.memory_space<vmem>>, vector<64x32xf32>
    %c1 = arith.constant 1 : index
    %c0_6 = arith.constant 0 : index
    %4 = vector.load %arg2[%c1, %c0_6] : memref<4x128xf32, #tpu.memory_space<vmem>>, vector<1x32xf32>
    %cst = arith.constant dense<0.000000e+00> : vector<8x128xf32>
    %5 = tpu.matmul %0, %1, %cst {dimension_numbers = #tpu.dot_dimension_numbers<[1], [0], [0], [1], [0, 0, 1, 1], [], []>} : vector<8x32xf32>, vector<32x128xf32>, vector<8x128xf32> -> vector<8x128xf32>
    %6 = vector.broadcast %2 : vector<1x128xf32> to vector<8x128xf32>
    %7 = arith.addf %5, %6 : vector<8x128xf32>
    %8 = vector.extract_strided_slice %7 {offsets = [0, 0], sizes = [8, 64], strides = [1, 1]} : vector<8x128xf32> to vector<8x64xf32>
    %9 = vector.extract_strided_slice %7 {offsets = [0, 64], sizes = [8, 64], strides = [1, 1]} : vector<8x128xf32> to vector<8x64xf32>
    %cst_7 = arith.constant 0.000000e+00 : f32
    %10 = vector.broadcast %cst_7 : f32 to vector<8x64xf32>
    %11 = arith.subf %10, %9 : vector<8x64xf32>
    %12 = math.exp %11 : vector<8x64xf32>
    %cst_8 = arith.constant 1.000000e+00 : f32
    %13 = vector.broadcast %cst_8 : f32 to vector<8x64xf32>
    %14 = arith.addf %13, %12 : vector<8x64xf32>
    %15 = tpu.reciprocal %14 {approx = true} : vector<8x64xf32> -> vector<8x64xf32>
    %16 = arith.mulf %9, %15 : vector<8x64xf32>
    %17 = arith.mulf %8, %16 : vector<8x64xf32>
    %cst_9 = arith.constant dense<0.000000e+00> : vector<8x32xf32>
    %18 = tpu.matmul %17, %3, %cst_9 {dimension_numbers = #tpu.dot_dimension_numbers<[1], [0], [0], [1], [0, 0, 1, 1], [], []>} : vector<8x64xf32>, vector<64x32xf32>, vector<8x32xf32> -> vector<8x32xf32>
    %19 = vector.broadcast %4 : vector<1x32xf32> to vector<8x32xf32>
    %20 = arith.addf %18, %19 : vector<8x32xf32>
    %c96 = arith.constant 96 : index
    %c0_10 = arith.constant 0 : index
    %21 = vector.load %arg1[%c96, %c0_10] : memref<192x128xf32, #tpu.memory_space<vmem>>, vector<32x128xf32>
    %c2 = arith.constant 2 : index
    %c0_11 = arith.constant 0 : index
    %22 = vector.load %arg2[%c2, %c0_11] : memref<4x128xf32, #tpu.memory_space<vmem>>, vector<1x128xf32>
    %c128 = arith.constant 128 : index
    %c0_12 = arith.constant 0 : index
    %23 = vector.load %arg1[%c128, %c0_12] : memref<192x128xf32, #tpu.memory_space<vmem>>, vector<64x16xf32>
    %c3 = arith.constant 3 : index
    %c0_13 = arith.constant 0 : index
    %24 = vector.load %arg2[%c3, %c0_13] : memref<4x128xf32, #tpu.memory_space<vmem>>, vector<1x16xf32>
    %cst_14 = arith.constant dense<0.000000e+00> : vector<8x128xf32>
    %25 = tpu.matmul %20, %21, %cst_14 {dimension_numbers = #tpu.dot_dimension_numbers<[1], [0], [0], [1], [0, 0, 1, 1], [], []>} : vector<8x32xf32>, vector<32x128xf32>, vector<8x128xf32> -> vector<8x128xf32>
    %26 = vector.broadcast %22 : vector<1x128xf32> to vector<8x128xf32>
    %27 = arith.addf %25, %26 : vector<8x128xf32>
    %28 = vector.extract_strided_slice %27 {offsets = [0, 0], sizes = [8, 64], strides = [1, 1]} : vector<8x128xf32> to vector<8x64xf32>
    %29 = vector.extract_strided_slice %27 {offsets = [0, 64], sizes = [8, 64], strides = [1, 1]} : vector<8x128xf32> to vector<8x64xf32>
    %cst_15 = arith.constant 0.000000e+00 : f32
    %30 = vector.broadcast %cst_15 : f32 to vector<8x64xf32>
    %31 = arith.subf %30, %29 : vector<8x64xf32>
    %32 = math.exp %31 : vector<8x64xf32>
    %cst_16 = arith.constant 1.000000e+00 : f32
    %33 = vector.broadcast %cst_16 : f32 to vector<8x64xf32>
    %34 = arith.addf %33, %32 : vector<8x64xf32>
    %35 = tpu.reciprocal %34 {approx = true} : vector<8x64xf32> -> vector<8x64xf32>
    %36 = arith.mulf %29, %35 : vector<8x64xf32>
    %37 = arith.mulf %28, %36 : vector<8x64xf32>
    %cst_17 = arith.constant dense<0.000000e+00> : vector<8x16xf32>
    %38 = tpu.matmul %37, %23, %cst_17 {dimension_numbers = #tpu.dot_dimension_numbers<[1], [0], [0], [1], [0, 0, 1, 1], [], []>} : vector<8x64xf32>, vector<64x16xf32>, vector<8x16xf32> -> vector<8x16xf32>
    %39 = vector.broadcast %24 : vector<1x16xf32> to vector<8x16xf32>
    %40 = arith.addf %38, %39 : vector<8x16xf32>
    %cst_18 = arith.constant 0.000000e+00 : f32
    %41 = vector.broadcast %cst_18 : f32 to vector<8x16xf32>
    %42 = arith.subf %41, %40 : vector<8x16xf32>
    %43 = math.exp %42 : vector<8x16xf32>
    %cst_19 = arith.constant 1.000000e+00 : f32
    %44 = vector.broadcast %cst_19 : f32 to vector<8x16xf32>
    %45 = arith.addf %44, %43 : vector<8x16xf32>
    %cst_20 = arith.constant 1.000000e+00 : f32
    %46 = vector.broadcast %cst_20 : f32 to vector<8x16xf32>
    %47 = arith.divf %46, %45 : vector<8x16xf32>
    %c0_21 = arith.constant 0 : index
    %c0_22 = arith.constant 0 : index
    %48 = vector.load %arg3[%c0_21, %c0_22] : memref<8x16xf32, #tpu.memory_space<vmem>>, vector<8x16xf32>
    tpu.vector_store %arg3[%c0_21, %c0_22], %47 {strides = array<i32>} : memref<8x16xf32, #tpu.memory_space<vmem>>, vector<8x16xf32>,
    return
  }
}

</mosaic_0001>

<bundles_post_ra>
// kernel: policy_forward.1
= control target key start
LH: loop header
LB: loop body
LE: loop exit
PB: predicated region body
PF: predicated region fallthrough
CT: control target
= control target key end

     0   :  { %8 = vsyncpa [#allocation3], 0  ;;  %s761_s0 = inlined_call_operand.hbm [shape: f32[8,32], index: 0, kind: input, shape index: {}]   ;;  %s762_s1 = inlined_call_operand.hbm [shape: f32[192,128], index: 1, kind: input, shape index: {}]   ;;  %s763_s2 = inlined_call_operand.vmem [shape: f32[4,128], index: 2, kind: input, shape index: {}]   ;;  %s764_s3 = inlined_call_operand.hbm [shape: f32[8,16], index: 3, kind: output, shape index: {}]  }
   0x1   :  { %9 = vsyncpa [#allocation6], 0 }
   0x2   :  { %10 = vsyncpa [#allocation4], 0  ;;  %s651_s12 = smov [#allocation2]   ;;  %s652_s14 = smov [#allocation5]  }
   0x3   :  { %s17_s13 = sshll.u32 %s651_s12, 4  ;;  %s26_s15 = sshll.u32 %s652_s14, 4  ;;  %s18_s13 = int_to_ptr.vmem [resolvable:$true] %s17_s13  ;;  %s680_s15 = int_to_ptr.vmem [resolvable:$true] %s26_s15 }
   0x4   :  { %s579_s18 = scalar_lea.hbm %s761_s0, 128 }
   0x5   :  { %p580_p0 = scmp.ne.s32.totalorder %s761_s0, %s579_s18  ;;  %p583_p1 = scmp.lt.u32.totalorder %s579_s18, %s761_s0 }
   0x7   :  { %p585_p2 = pnand %p583_p1, %p580_p0 }
   0x9   :  { %588 = shalt.err (!%p585_p2)
}
   0xa   :  { %s589_s23 = scalar_lea.vmem %s18_s13, 128  ;;  %p594_p4 = scmp.lt.s32.totalorder %s18_s13, %s18_s13 }
   0xb   :  { %p590_p3 = scmp.ne.s32.totalorder %s18_s13, %s589_s23  ;;  %p595_p5 = scmp.lt.s32.totalorder %s589_s23, %s589_s23 }
   0xd   :  { %p596_p6 = por %p595_p5, %p594_p4 }
   0xf   :  { %p597_p7 = pnand %p596_p6, %p590_p3 }
  0x11   :  { %600 = shalt.err (!%p597_p7)
}
  0x12   :  { %20 = dma.hbm_to_vmem [thread:$0]  %s761_s0, 128, %s18_s13, [#allocation3]  }
  0x13   :  { %s601_s28 = scalar_lea.hbm %s762_s1, 3072 }
  0x14   :  { %p602_p8 = scmp.ne.s32.totalorder %s762_s1, %s601_s28  ;;  %p605_p9 = scmp.lt.u32.totalorder %s601_s28, %s762_s1 }
  0x16   :  { %p607_p10 = pnand %p605_p9, %p602_p8 }
  0x18   :  { %610 = shalt.err (!%p607_p10)
}
  0x19   :  { %s611_s6 = scalar_lea.vmem %s680_s15, 3072  ;;  %p616_p12 = scmp.lt.s32.totalorder %s680_s15, %s680_s15 }
  0x1a   :  { %p612_p11 = scmp.ne.s32.totalorder %s680_s15, %s611_s6  ;;  %p617_p13 = scmp.lt.s32.totalorder %s611_s6, %s611_s6 }
  0x1c   :  { %p618_p0 = por %p617_p13, %p616_p12 }
  0x1e   :  { %p619_p1 = pnand %p618_p0, %p612_p11 }
  0x20   :  { %622 = shalt.err (!%p619_p1)
}
  0x21   :  { %s653_s0 = smov 128   ;;  %s654_s7 = smov 8  }
  0x22   :  { %32 = dma.hbm_to_vmem [thread:$0]  %s762_s1, 3072, %s680_s15, [#allocation6], %s653_s0, %s653_s0, %s654_s7  }
  0x23   :  { %645 = dma.done.wait [#allocation3], 128  }
  0x24   :  { %646 = vsyncadd [#allocation3], 4294967168 }
  0x25   :  { %647 = dma.done.wait [#allocation6], 3072  }
  0x26   :  { %648 = vsyncadd [#allocation6], 4294964224  ;;  %v655_v0 = vmov 0.0|0.0   ;;  %vm656_vm0 = vmmov 0   ;;  %v657_v1 = vmov 0.0   ;;  %v42_v2 = vld [vmem:[#allocation5] sm:$0xff] }
  0x27   :  { %522 = vmatprep.subr.bf16.mxu1 %v655_v0  ;;  %470 = vmatprep.mubr.msk.f32.mxu1 %vm656_vm0, %v657_v1  ;;  %v43_v3 = vld [vmem:[#allocation5 + $0x8] sm:$0xff]  ;;  %v44_v4 = vld [vmem:[#allocation5 + $0x10] sm:$0xff]  ;;  %v45_v6 = vld [vmem:[#allocation5 + $0x18] sm:$0xff]  ;;  %vm60_vm1 = vcmask 261120   ;;  %s658_s11 = smov 64   ;;  %vm149_vm2 = vcmask 523264  }
  0x28   :  { %540 = vmatprep.subr.bf16.mxu0 %v655_v0  ;;  %500 = vmatprep.mubr.msk.f32.mxu0 %vm656_vm0, %v657_v1  ;;  %v523_v5 = vpack.c.bf16 %v43_v3, %v42_v2  ;;  %v526_v7 = vpack.c.bf16 %v45_v6, %v44_v4  ;;  %v41_v8 = vld [vmem:[#allocation2] sm:$0xff]  ;;  %v47_v9 = vld [vmem:[#allocation5 + $0x20] sm:$0xff]  ;;  %v48_v10 = vld [vmem:[#allocation5 + $0x28] sm:$0xff]  ;;  %s659_s18 = smov [#allocation7]   ;;  %vm408_vm3 = vcmask 130048  }
  0x29   :  { %v49_v11 = vld [vmem:[#allocation5 + $0x30] sm:$0xff]  ;;  %v529_v12 = vpack.c.bf16 %v48_v10, %v47_v9  ;;  %v50_v13 = vld [vmem:[#allocation5 + $0x38] sm:$0xff]  ;;  %v51_v15 = vld [vmem:[#allocation5 + $0x40] sm:$0xff]  ;;  %s416_s19 = sshll.u32 %s659_s18, 4  ;;  %s417_s19 = int_to_ptr.vmem [resolvable:$true] %s416_s19 }
  0x2a   :  { %524 = vmatpush3.bf16.msra.mxu1 %v523_v5  ;;  %v532_v14 = vpack.c.bf16 %v50_v13, %v49_v11  ;;  %v52_v16 = vld [vmem:[#allocation5 + $0x48] sm:$0xff]  ;;  %v53_v18 = vld [vmem:[#allocation5 + $0x50] sm:$0xff]  ;;  %v54_v19 = vld [vmem:[#allocation5 + $0x58] sm:$0xff]  ;;  %s623_s20 = scalar_lea.vmem %s417_s19, 128  ;;  %p628_p3 = scmp.lt.s32.totalorder %s417_s19, %s417_s19 }
  0x2b   :  { %525 = vmatprep.subr.bf16.mxu1 %v655_v0  ;;  %v535_v17 = vpack.c.bf16 %v52_v16, %v51_v15  ;;  %v538_v20 = vpack.c.bf16 %v54_v19, %v53_v18  ;;  %v426_v21 = vld [vmem:[%s763_s2] ss:$0 sm:$0xff]  ;;  %v223_v29 = vld [vmem:[#allocation5 + $0x60] sm:$0xff]  ;;  %v224_v30 = vld [vmem:[#allocation5 + $0x68] sm:$0xff]  ;;  %p624_p2 = scmp.ne.s32.totalorder %s417_s19, %s623_s20  ;;  %p629_p4 = scmp.lt.s32.totalorder %s623_s20, %s623_s20 }
  0x2c   :  { %v541_v31 = vpack.c.bf16 %v224_v30, %v223_v29  ;;  %v225_v36 = vld [vmem:[#allocation5 + $0x70] sm:$0xff]  ;;  %v226_v37 = vld [vmem:[#allocation5 + $0x78] sm:$0xff]  ;;  %v228_v43 = vld [vmem:[#allocation5 + $0x80] sm:$0xff] }
  0x2d   :  { %v544_v38 = vpack.c.bf16 %v226_v37, %v225_v36  ;;  %v428_v39 = vld [vmem:[%s763_s2 + $0x1] ss:$0 sm:$0xff]  ;;  %v229_v44 = vld [vmem:[#allocation5 + $0x88] sm:$0xff]  ;;  %v230_v45 = vld [vmem:[#allocation5 + $0x90] sm:$0xff]  ;;  %p630_p5 = por %p629_p4, %p628_p3 }
  0x2e   :  { %527 = vmatpush3.bf16.msra.mxu1 %v526_v7  ;;  %542 = vmatpush3.bf16.msra.mxu0 %v541_v31  ;;  %v547_v46 = vpack.c.bf16 %v229_v44, %v228_v43  ;;  %v231_v47 = vld [vmem:[#allocation5 + $0x98] sm:$0xff]  ;;  %v232_v49 = vld [vmem:[#allocation5 + $0xa0] sm:$0xff]  ;;  %v233_v50 = vld [vmem:[#allocation5 + $0xa8] sm:$0xff] }
  0x2f   :  { %528 = vmatprep.subr.bf16.mxu1 %v655_v0  ;;  %543 = vmatprep.subr.bf16.mxu0 %v655_v0  ;;  %v550_v48 = vpack.c.bf16 %v231_v47, %v230_v45  ;;  %v553_v51 = vpack.c.bf16 %v233_v50, %v232_v49  ;;  %v234_v52 = vld [vmem:[#allocation5 + $0xb0] sm:$0xff]  ;;  %v235_v53 = vld [vmem:[#allocation5 + $0xb8] sm:$0xff]  ;;  %p631_p6 = pnand %p630_p5, %p624_p2 }
  0x30   :  { %v556_v54 = vpack.c.bf16 %v235_v53, %v234_v52  ;;  %v430_v55 = vld [vmem:[%s763_s2 + $0x2] ss:$0 sm:$0xff]  ;;  %v432_v3 = vld [vmem:[%s763_s2 + $0x3] ss:$0 sm:$0xff] }
  0x31   :  { %471 = vmatmul.mubr.msk.f32.vlgmr.msra.gmra.mrb[0].mxu1 %vm60_vm1, %v41_v8 }
  0x32   :  { %489 = vmatprep.mubr.msk.f32.mxu1 %vm656_vm0, %v657_v1  ;;  %530 = vmatpush3.bf16.msra.mxu1 %v529_v12 }
  0x33   :  { %531 = vmatprep.subr.bf16.mxu1 %v655_v0  ;;  %545 = vmatpush3.bf16.msra.mxu0 %v544_v38 }
  0x34   :  { %546 = vmatprep.subr.bf16.mxu0 %v655_v0 }
  0x36   :  { %533 = vmatpush3.bf16.msra.mxu1 %v532_v14 }
  0x37   :  { %534 = vmatprep.subr.bf16.mxu1 %v655_v0 }
  0x3a   :  { %536 = vmatpush3.bf16.msra.mxu1 %v535_v17 }
  0x3b   :  { %537 = vmatprep.subr.bf16.mxu1 %v655_v0 }
  0x3e   :  { %539 = vmatpush3.bf16.msra.mxu1 %v538_v20 }
 0x104   :  { %v130_v22 = vpop.f32.mrb[0].mxu1 }
 0x105   :  { %v131_v23 = vadd.f32 %v426_v21, %v130_v22  ;;  %v472_v24 = vpop.f32.mrb[1].mxu1 }
 0x107   :  { %v134_v25 = vsub.f32 0.0, %v131_v23 }
 0x109   :  { %v135_v26 = vmul.f32 1.442695, %v134_v25 }
 0x10b   :  { %567 = vpow2.f32 %v135_v26 }
 0x115   :  { %v568_v27 = vpop.eup %567 }
 0x116   :  { %v137_v28 = vadd.f32 1.0, %v568_v27 }
 0x118   :  { %569 = vrcp.f32 %v137_v28 }
 0x122   :  { %v570_v32 = vpop.eup %569 }
 0x123   :  { %v139_v33 = vmul.f32 %v570_v32, %v131_v23 }
 0x125   :  { %141 = vrot.lane.b32.xlu0 %v139_v33, %s658_s11 }
 0x197   :  { %v142_v34 = vpop.permute.xlu0 %141 }
 0x198   :  { %v144_v35 = vmul.f32 %v142_v34, %v131_v23 }
 0x19a   :  { %490 = vmatmul.mubr.msk.f32.vlgmr.msra.gmra.mrb[2].mxu1 %vm149_vm2, %v144_v35 }
 0x26d   :  { %v219_v40 = vpop.f32.mrb[2].mxu1 }
 0x26e   :  { %v220_v41 = vadd.f32 %v428_v39, %v219_v40  ;;  %v491_v42 = vpop.f32.mrb[3].mxu1 }
 0x270   :  { %501 = vmatmul.mubr.msk.f32.vlgmr.msra.gmra.mrb[0].mxu0 %vm60_vm1, %v220_v41 }
 0x271   :  { %519 = vmatprep.mubr.msk.f32.mxu0 %vm656_vm0, %v657_v1  ;;  %548 = vmatpush3.bf16.msra.mxu0 %v547_v46 }
 0x272   :  { %549 = vmatprep.subr.bf16.mxu0 %v655_v0 }
 0x275   :  { %551 = vmatpush3.bf16.msra.mxu0 %v550_v48 }
 0x276   :  { %552 = vmatprep.subr.bf16.mxu0 %v655_v0 }
 0x279   :  { %554 = vmatpush3.bf16.msra.mxu0 %v553_v51 }
 0x27a   :  { %555 = vmatprep.subr.bf16.mxu0 %v655_v0 }
 0x27d   :  { %557 = vmatpush3.bf16.msra.mxu0 %v556_v54 }
 0x343   :  { %v310_v56 = vpop.f32.mrb[0].mxu0 }
 0x344   :  { %v311_v57 = vadd.f32 %v430_v55, %v310_v56  ;;  %v502_v58 = vpop.f32.mrb[1].mxu0 }
 0x346   :  { %v314_v59 = vsub.f32 0.0, %v311_v57 }
 0x348   :  { %v315_v60 = vmul.f32 1.442695, %v314_v59 }
 0x34a   :  { %571 = vpow2.f32 %v315_v60 }
 0x354   :  { %v572_v61 = vpop.eup %571 }
 0x355   :  { %v317_v62 = vadd.f32 1.0, %v572_v61 }
 0x357   :  { %573 = vrcp.f32 %v317_v62 }
 0x361   :  { %v574_v63 = vpop.eup %573 }
 0x362   :  { %v319_v1 = vmul.f32 %v574_v63, %v311_v57 }
 0x364   :  { %321 = vrot.lane.b32.xlu0 %v319_v1, %s658_s11 }
 0x3d6   :  { %v322_v2 = vpop.permute.xlu0 %321 }
 0x3d7   :  { %v324_v0 = vmul.f32 %v322_v2, %v311_v57 }
 0x3d9   :  { %520 = vmatmul.mubr.msk.f32.vlgmr.msra.gmra.mrb[2].mxu0 %vm149_vm2, %v324_v0 }
 0x4ac   :  { %v398_v4 = vpop.f32.mrb[2].mxu0 }
 0x4ad   :  { %v399_v5 = vadd.f32 %v432_v3, %v398_v4  ;;  %v521_v6 = vpop.f32.mrb[3].mxu0 }
 0x4af   :  { %v402_v7 = vsub.f32 0.0, %v399_v5 }
 0x4b1   :  { %v403_v8 = vmul.f32 1.442695, %v402_v7 }
 0x4b3   :  { %575 = vpow2.f32 %v403_v8 }
 0x4bd   :  { %v576_v9 = vpop.eup %575 }
 0x4be   :  { %v405_v10 = vadd.f32 1.0, %v576_v9 }
 0x4c0   :  { %577 = vrcp.f32 %v405_v10 }
 0x4ca   :  { %v578_v11 = vpop.eup %577 }
 0x4cb   :  { %409 = vst.msk [vmem:[#allocation7] sm:$0xff] %vm408_vm3, %v578_v11 }
 0x4cc   :  { %634 = shalt.err (!%p631_p6)
}
 0x4cd   :  { %s635_s22 = scalar_lea.hbm %s764_s3, 128 }
 0x4ce   :  { %p636_p7 = scmp.ne.s32.totalorder %s764_s3, %s635_s22  ;;  %p639_p8 = scmp.lt.u32.totalorder %s635_s22, %s764_s3 }
 0x4d0   :  { %p641_p9 = pnand %p639_p8, %p636_p7 }
 0x4d2   :  { %644 = shalt.err (!%p641_p9)
}
 0x4d3   :  { %419 = dma.vmem_to_hbm [thread:$0]  %s417_s19, 128, %s764_s3, [#allocation4]  }
 0x4d4   :  { %649 = dma.done.wait [#allocation4], 128  }
 0x4d5   :  { %650 = vsyncadd [#allocation4], 4294967168 }
 0x4d6   :  { %423 = vsyncpa [#allocation3], 1 }
 0x4d7   :  { %424 = vsyncpa [#allocation6], 1 }
 0x4d8   :  { %425 = vsyncpa [#allocation4], 1 }

</bundles_post_ra>
